<compile_context>
chip_gen: v7x
topology: tpu7x:2x2x1
jax: 0.10.0
libtpu: 0.0.40
codegen_flags: <defaults>
</compile_context>

<pallas_src>
import jax
import jax.numpy as jnp
from jax import lax
from jax.experimental import pallas as pl
from jax.experimental.pallas import tpu as pltpu

_EPS = 1e-5


def _round_up(x, m):
    return ((x + m - 1) // m) * m


def _loss_kernel(a_ref, b_ref, out_ref):
    # a_ref / b_ref: (TB, N) slab, one LayerNorm row per batch element.
    a = a_ref[...].astype(jnp.float32)
    b = b_ref[...].astype(jnp.float32)

    # Per-row LayerNorm (stats over the flattened S*H axis), two-pass variance.
    mu_a = jnp.mean(a, axis=1, keepdims=True)
    ac = a - mu_a
    var_a = jnp.mean(ac * ac, axis=1, keepdims=True)
    a_n = ac * lax.rsqrt(var_a + _EPS)

    mu_b = jnp.mean(b, axis=1, keepdims=True)
    bc = b - mu_b
    var_b = jnp.mean(bc * bc, axis=1, keepdims=True)
    b_n = bc * lax.rsqrt(var_b + _EPS)

    # Partial sum of |diff| for this block of batch rows.  Zero-padded batch
    # rows normalize to exactly 0 and contribute nothing.
    s = jnp.sum(jnp.abs(a_n - b_n))

    # One output block per grid step (no resident accumulator) so the batch
    # grid axis is truly "parallel" (both TCs on v7x).
    out_ref[...] = jnp.full(out_ref.shape, s, dtype=jnp.float32)


def feature_reconstruction_loss(input_features, reconstructed_features,
                                *, vmem_budget_bytes=8 * 1024 * 1024):
    """input_features, reconstructed_features: (B, 150, hidden_dims)."""
    assert input_features.shape == reconstructed_features.shape
    B, S, H = input_features.shape
    N = S * H

    # Lane-dense layout: flatten the normalized dims onto the lane axis.
    x = input_features.reshape(B, N)
    y = reconstructed_features.reshape(B, N)

    # Rows per grid step: fit 2 inputs x 2 pipeline buffers in the budget,
    # multiple of 8 for sublane alignment, no larger than the padded batch.
    bytes_per_row = N * jnp.dtype(x.dtype).itemsize
    tb = max(1, vmem_budget_bytes // (4 * bytes_per_row))
    tb = max(8, (tb // 8) * 8)
    tb = min(tb, _round_up(B, 8))

    b_pad = _round_up(B, tb)
    if b_pad != B:
        # Zero rows LayerNorm to all-zeros for both inputs -> |diff| == 0.
        pad_x = jnp.zeros((b_pad - B, N), dtype=x.dtype)
        pad_y = jnp.zeros((b_pad - B, N), dtype=y.dtype)
        x = jnp.concatenate([x, pad_x], axis=0)
        y = jnp.concatenate([y, pad_y], axis=0)

    grid = b_pad // tb

    partials = pl.pallas_call(
        _loss_kernel,
        out_shape=jax.ShapeDtypeStruct((grid, 8, 128), jnp.float32),
        grid=(grid,),
        in_specs=[
            pl.BlockSpec((tb, N), lambda i: (i, 0)),
            pl.BlockSpec((tb, N), lambda i: (i, 0)),
        ],
        out_specs=pl.BlockSpec((1, 8, 128), lambda i: (i, 0, 0)),
        compiler_params=pltpu.CompilerParams(
            dimension_semantics=("parallel",),      # independent per-step blocks
            vmem_limit_bytes=32 * 1024 * 1024,       # portable across v5e/v6e/v7x
        ),
    )(x, y)

    total = jnp.sum(partials[:, 0, 0])
    return total / jnp.float32(B * S * H)


def _reference_loss(x, y):
    """Pure-JAX reference matching torch.nn.LayerNorm([150, H]) semantics."""
    def ln(z):
        mu = jnp.mean(z, axis=(-2, -1), keepdims=True)
        var = jnp.mean((z - mu) ** 2, axis=(-2, -1), keepdims=True)
        return (z - mu) * lax.rsqrt(var + _EPS)
    return jnp.mean(jnp.abs(ln(x) - ln(y)))


if __name__ == "__main__":
    B, S, H = 2, 150, 32          # S is fixed to 150 by the module definition
    key = jax.random.PRNGKey(0)
    k1, k2 = jax.random.split(key)
    x = jax.random.normal(k1, (B, S, H), dtype=jnp.float32)
    y = jax.random.normal(k2, (B, S, H), dtype=jnp.float32)

    loss = feature_reconstruction_loss(x, y)
    loss = jax.block_until_ready(loss)

    ref = jax.block_until_ready(_reference_loss(x, y))
    assert jnp.allclose(loss, ref, rtol=1e-5, atol=1e-5), (loss, ref)

    print("KERNEL_OK")
</pallas_src>

<mosaic_0001>
module attributes {stable_mosaic.version = 11 : i64} {
  func.func @_loss_kernel(%arg0: i32, %arg1: memref<8x4800xf32, #tpu.memory_space<vmem>>, %arg2: memref<8x4800xf32, #tpu.memory_space<vmem>>, %arg3: memref<1x8x128xf32, #tpu.memory_space<vmem>>) attributes {dimension_semantics = [#tpu.dimension_semantics<parallel>], iteration_bounds = array<i64: 1>, scalar_prefetch = 0 : i64, scratch_operands = 0 : i64, tpu.core_type = #tpu.core_type<tc>, window_params = [{transform_indices = @transform_0, window_bounds = array<i64: 8, 4800>}, {transform_indices = @transform_1, window_bounds = array<i64: 8, 4800>}, {transform_indices = @transform_2, window_bounds = array<i64: 1, 8, 128>}]} {
    %c0 = arith.constant 0 : index
    %c0_0 = arith.constant 0 : index
    %0 = vector.load %arg1[%c0, %c0_0] : memref<8x4800xf32, #tpu.memory_space<vmem>>, vector<8x4800xf32>
    %c0_1 = arith.constant 0 : index
    %c0_2 = arith.constant 0 : index
    %1 = vector.load %arg2[%c0_1, %c0_2] : memref<8x4800xf32, #tpu.memory_space<vmem>>, vector<8x4800xf32>
    %cst = arith.constant dense<0.000000e+00> : vector<8xf32>
    %2 = vector.multi_reduction <add>, %0, %cst [1] : vector<8x4800xf32> to vector<8xf32>
    %3 = vector.shape_cast %2 : vector<8xf32> to vector<8x1xf32>
    %cst_3 = arith.constant 4.800000e+03 : f32
    %4 = vector.broadcast %cst_3 : f32 to vector<8x1xf32>
    %5 = arith.divf %3, %4 : vector<8x1xf32>
    %6 = vector.broadcast %5 : vector<8x1xf32> to vector<8x4800xf32>
    %7 = arith.subf %0, %6 : vector<8x4800xf32>
    %8 = arith.mulf %7, %7 : vector<8x4800xf32>
    %cst_4 = arith.constant dense<0.000000e+00> : vector<8xf32>
    %9 = vector.multi_reduction <add>, %8, %cst_4 [1] : vector<8x4800xf32> to vector<8xf32>
    %10 = vector.shape_cast %9 : vector<8xf32> to vector<8x1xf32>
    %cst_5 = arith.constant 4.800000e+03 : f32
    %11 = vector.broadcast %cst_5 : f32 to vector<8x1xf32>
    %12 = arith.divf %10, %11 : vector<8x1xf32>
    %cst_6 = arith.constant 9.99999974E-6 : f32
    %13 = vector.broadcast %cst_6 : f32 to vector<8x1xf32>
    %14 = arith.addf %12, %13 : vector<8x1xf32>
    %15 = math.rsqrt %14 : vector<8x1xf32>
    %16 = vector.broadcast %15 : vector<8x1xf32> to vector<8x4800xf32>
    %17 = arith.mulf %7, %16 : vector<8x4800xf32>
    %cst_7 = arith.constant dense<0.000000e+00> : vector<8xf32>
    %18 = vector.multi_reduction <add>, %1, %cst_7 [1] : vector<8x4800xf32> to vector<8xf32>
    %19 = vector.shape_cast %18 : vector<8xf32> to vector<8x1xf32>
    %cst_8 = arith.constant 4.800000e+03 : f32
    %20 = vector.broadcast %cst_8 : f32 to vector<8x1xf32>
    %21 = arith.divf %19, %20 : vector<8x1xf32>
    %22 = vector.broadcast %21 : vector<8x1xf32> to vector<8x4800xf32>
    %23 = arith.subf %1, %22 : vector<8x4800xf32>
    %24 = arith.mulf %23, %23 : vector<8x4800xf32>
    %cst_9 = arith.constant dense<0.000000e+00> : vector<8xf32>
    %25 = vector.multi_reduction <add>, %24, %cst_9 [1] : vector<8x4800xf32> to vector<8xf32>
    %26 = vector.shape_cast %25 : vector<8xf32> to vector<8x1xf32>
    %cst_10 = arith.constant 4.800000e+03 : f32
    %27 = vector.broadcast %cst_10 : f32 to vector<8x1xf32>
    %28 = arith.divf %26, %27 : vector<8x1xf32>
    %cst_11 = arith.constant 9.99999974E-6 : f32
    %29 = vector.broadcast %cst_11 : f32 to vector<8x1xf32>
    %30 = arith.addf %28, %29 : vector<8x1xf32>
    %31 = math.rsqrt %30 : vector<8x1xf32>
    %32 = vector.broadcast %31 : vector<8x1xf32> to vector<8x4800xf32>
    %33 = arith.mulf %23, %32 : vector<8x4800xf32>
    %34 = arith.subf %17, %33 : vector<8x4800xf32>
    %35 = math.absf %34 : vector<8x4800xf32>
    %36 = vector.shape_cast %35 : vector<8x4800xf32> to vector<1x8x4800xf32>
    %cst_12 = arith.constant dense<0.000000e+00> : vector<1xf32>
    %37 = vector.multi_reduction <add>, %36, %cst_12 [1, 2] : vector<1x8x4800xf32> to vector<1xf32>
    %38 = vector.shape_cast %37 : vector<1xf32> to vector<1x1x1xf32>
    %39 = vector.extract %38[0, 0, 0] : f32 from vector<1x1x1xf32>
    %40 = vector.broadcast %39 : f32 to vector<1x8x128xf32>
    %c0_13 = arith.constant 0 : index
    %c0_14 = arith.constant 0 : index
    %c0_15 = arith.constant 0 : index
    %41 = vector.load %arg3[%c0_13, %c0_14, %c0_15] : memref<1x8x128xf32, #tpu.memory_space<vmem>>, vector<1x8x128xf32>
    tpu.vector_store %arg3[%c0_13, %c0_14, %c0_15], %40 {strides = array<i32>} : memref<1x8x128xf32, #tpu.memory_space<vmem>>, vector<1x8x128xf32>,
    return
  }
  func.func @transform_0(%arg0: i32) -> (i32, i32) {
    %c0_i32 = arith.constant 0 : i32
    %c0_i32_0 = arith.constant 0 : i32
    return %arg0, %c0_i32 : i32, i32
  }
  func.func @transform_1(%arg0: i32) -> (i32, i32) {
    %c0_i32 = arith.constant 0 : i32
    %c0_i32_0 = arith.constant 0 : i32
    return %arg0, %c0_i32 : i32, i32
  }
  func.func @transform_2(%arg0: i32) -> (i32, i32, i32) {
    %c0_i32 = arith.constant 0 : i32
    %c0_i32_0 = arith.constant 0 : i32
    %c0_i32_1 = arith.constant 0 : i32
    return %arg0, %c0_i32, %c0_i32_0 : i32, i32, i32
  }
}

</mosaic_0001>

<bundles_post_ra>
// kernel: tpu_custom_call.1
= control target key start
LH: loop header
LB: loop body
LE: loop exit
PB: predicated region body
PF: predicated region fallthrough
CT: control target
= control target key end

     0   :  { %7 = vsyncpa [#allocation3], 0  ;;  %s1700_s0 = inlined_call_operand.hbm [shape: f32[8,4800], index: 0, kind: input, shape index: {}]   ;;  %s1701_s1 = inlined_call_operand.hbm [shape: f32[8,4800], index: 1, kind: input, shape index: {}]   ;;  %s1702_s2 = inlined_call_operand.hbm [shape: f32[1,8,128], index: 2, kind: output, shape index: {}]  }
   0x1   :  { %8 = vsyncpa [#allocation6], 0 }
   0x2   :  { %9 = vsyncpa [#allocation4], 0  ;;  %s732_s9 = smov [#allocation2]   ;;  %s733_s11 = smov [#allocation5]  }
   0x3   :  { %s16_s10 = sshll.u32 %s732_s9, 4  ;;  %s26_s12 = sshll.u32 %s733_s11, 4  ;;  %s17_s10 = int_to_ptr.vmem [resolvable:$true] %s16_s10  ;;  %s27_s12 = int_to_ptr.vmem [resolvable:$true] %s26_s12 }
   0x4   :  { %s660_s15 = scalar_lea.hbm %s1700_s0, 4864 }
   0x5   :  { %p661_p0 = scmp.ne.s32.totalorder %s1700_s0, %s660_s15  ;;  %p664_p1 = scmp.lt.u32.totalorder %s660_s15, %s1700_s0 }
   0x7   :  { %p666_p2 = pnand %p664_p1, %p661_p0 }
   0x9   :  { %669 = shalt.err (!%p666_p2)
}
   0xa   :  { %s670_s20 = scalar_lea.vmem %s17_s10, 4864  ;;  %p675_p4 = scmp.lt.s32.totalorder %s17_s10, %s17_s10 }
   0xb   :  { %p671_p3 = scmp.ne.s32.totalorder %s17_s10, %s670_s20  ;;  %p676_p5 = scmp.lt.s32.totalorder %s670_s20, %s670_s20 }
   0xd   :  { %p677_p6 = por %p676_p5, %p675_p4 }
   0xf   :  { %p678_p7 = pnand %p677_p6, %p671_p3 }
  0x11   :  { %681 = shalt.err (!%p678_p7)
}
  0x12   :  { %19 = dma.hbm_to_vmem [thread:$0]  %s1700_s0, 4864, %s17_s10, [#allocation3]  }
  0x13   :  { %s682_s25 = scalar_lea.hbm %s1701_s1, 4864 }
  0x14   :  { %p683_p8 = scmp.ne.s32.totalorder %s1701_s1, %s682_s25  ;;  %p686_p9 = scmp.lt.u32.totalorder %s682_s25, %s1701_s1 }
  0x16   :  { %p688_p10 = pnand %p686_p9, %p683_p8 }
  0x18   :  { %691 = shalt.err (!%p688_p10)
}
  0x19   :  { %s692_s30 = scalar_lea.vmem %s27_s12, 4864  ;;  %p697_p12 = scmp.lt.s32.totalorder %s27_s12, %s27_s12 }
  0x1a   :  { %p693_p11 = scmp.ne.s32.totalorder %s27_s12, %s692_s30  ;;  %p698_p13 = scmp.lt.s32.totalorder %s692_s30, %s692_s30 }
  0x1c   :  { %p699_p0 = por %p698_p13, %p697_p12 }
  0x1e   :  { %p700_p1 = pnand %p699_p0, %p693_p11 }
  0x20   :  { %703 = shalt.err (!%p700_p1)
}
  0x21   :  { %29 = dma.hbm_to_vmem [thread:$0]  %s1701_s1, 4864, %s27_s12, [#allocation6]  }
  0x22   :  { %726 = dma.done.wait [#allocation3], 4864  }
  0x23   :  { %727 = vsyncadd [#allocation3], 4294962432 }
  0x24   :  { %728 = dma.done.wait [#allocation6], 4864  }
  0x25   :  { %729 = vsyncadd [#allocation6], 4294962432  ;;  %v774_v0 = vld [vmem:[#allocation2] sm:$0xff]  ;;  %v776_v1 = vld [vmem:[#allocation2 + $0x8] sm:$0xff]  ;;  %vm148_vm0 = vcmask 523264   ;;  %s734_s1 = smov [#allocation7]  }
  0x26   :  { %v778_v2 = vld [vmem:[#allocation2 + $0x10] sm:$0xff]  ;;  %v112_v3 = vadd.f32 %v776_v1, %v774_v0  ;;  %v782_v4 = vld [vmem:[#allocation2 + $0x18] sm:$0xff]  ;;  %v785_v6 = vld [vmem:[#allocation2 + $0x20] sm:$0xff]  ;;  %s641_s4 = sshll.u32 %s734_s1, 4  ;;  %s642_s4 = int_to_ptr.vmem [resolvable:$true] %s641_s4 }
  0x27   :  { %v788_v8 = vld [vmem:[#allocation2 + $0x28] sm:$0xff]  ;;  %v791_v10 = vld [vmem:[#allocation2 + $0x30] sm:$0xff]  ;;  %v794_v12 = vld [vmem:[#allocation2 + $0x38] sm:$0xff]  ;;  %s704_s6 = scalar_lea.vmem %s642_s4, 128  ;;  %p709_p3 = scmp.lt.s32.totalorder %s642_s4, %s642_s4 }
  0x28   :  { %v113_v5 = vadd.f32 %v112_v3, %v778_v2  ;;  %v797_v14 = vld [vmem:[#allocation2 + $0x40] sm:$0xff]  ;;  %v799_v15 = vld [vmem:[#allocation5] sm:$0xff]  ;;  %v802_v17 = vld [vmem:[#allocation5 + $0x8] sm:$0xff]  ;;  %p705_p2 = scmp.ne.s32.totalorder %s642_s4, %s704_s6  ;;  %p710_p4 = scmp.lt.s32.totalorder %s704_s6, %s704_s6 }
  0x29   :  { %v804_v18 = vld [vmem:[#allocation5 + $0x10] sm:$0xff]  ;;  %v806_v19 = vld [vmem:[#allocation2 + $0x48] sm:$0xff]  ;;  %v312_v20 = vadd.f32 %v802_v17, %v799_v15  ;;  %v813_v23 = vld [vmem:[#allocation2 + $0x50] sm:$0xff] }
  0x2a   :  { %v114_v7 = vadd.f32 %v113_v5, %v782_v4  ;;  %v811_v22 = vld [vmem:[#allocation5 + $0x18] sm:$0xff]  ;;  %v817_v26 = vld [vmem:[#allocation5 + $0x20] sm:$0xff]  ;;  %v819_v27 = vld [vmem:[#allocation2 + $0x58] sm:$0xff]  ;;  %p711_p5 = por %p710_p4, %p709_p3 }
  0x2b   :  { %v313_v24 = vadd.f32 %v312_v20, %v804_v18  ;;  %v823_v30 = vld [vmem:[#allocation5 + $0x28] sm:$0xff]  ;;  %v825_v31 = vld [vmem:[#allocation2 + $0x60] sm:$0xff]  ;;  %v831_v35 = vld [vmem:[#allocation2 + $0x68] sm:$0xff] }
  0x2c   :  { %v115_v9 = vadd.f32 %v114_v7, %v785_v6  ;;  %v829_v34 = vld [vmem:[#allocation5 + $0x30] sm:$0xff]  ;;  %v835_v38 = vld [vmem:[#allocation5 + $0x38] sm:$0xff]  ;;  %v837_v39 = vld [vmem:[#allocation2 + $0x70] sm:$0xff]  ;;  %p712_p6 = pnand %p711_p5, %p705_p2 }
  0x2d   :  { %v314_v28 = vadd.f32 %v313_v24, %v811_v22  ;;  %v841_v42 = vld [vmem:[#allocation5 + $0x40] sm:$0xff]  ;;  %v843_v43 = vld [vmem:[#allocation2 + $0x78] sm:$0xff]  ;;  %v849_v47 = vld [vmem:[#allocation2 + $0x80] sm:$0xff] }
  0x2e   :  { %v116_v11 = vadd.f32 %v115_v9, %v788_v8  ;;  %v847_v46 = vld [vmem:[#allocation5 + $0x48] sm:$0xff]  ;;  %v853_v50 = vld [vmem:[#allocation5 + $0x50] sm:$0xff]  ;;  %v855_v51 = vld [vmem:[#allocation2 + $0x88] sm:$0xff] }
  0x2f   :  { %v315_v32 = vadd.f32 %v314_v28, %v817_v26  ;;  %v859_v54 = vld [vmem:[#allocation5 + $0x58] sm:$0xff]  ;;  %v861_v55 = vld [vmem:[#allocation2 + $0x90] sm:$0xff]  ;;  %v867_v59 = vld [vmem:[#allocation2 + $0x98] sm:$0xff] }
  0x30   :  { %v117_v13 = vadd.f32 %v116_v11, %v791_v10  ;;  %v865_v58 = vld [vmem:[#allocation5 + $0x60] sm:$0xff]  ;;  %v871_v62 = vld [vmem:[#allocation5 + $0x68] sm:$0xff]  ;;  %v873_v63 = vld [vmem:[#allocation2 + $0xa0] sm:$0xff] }
  0x31   :  { %v316_v36 = vadd.f32 %v315_v32, %v823_v30  ;;  %v877_v7 = vld [vmem:[#allocation5 + $0x70] sm:$0xff]  ;;  %v879_v9 = vld [vmem:[#allocation2 + $0xa8] sm:$0xff]  ;;  %v885_v20 = vld [vmem:[#allocation2 + $0xb0] sm:$0xff] }
  0x32   :  { %v118_v16 = vadd.f32 %v117_v13, %v794_v12  ;;  %v891_v28 = vld [vmem:[#allocation2 + $0xb8] sm:$0xff] }
  0x33   :  { %v317_v40 = vadd.f32 %v316_v36, %v829_v34  ;;  %v897_v36 = vld [vmem:[#allocation2 + $0xc0] sm:$0xff] }
  0x34   :  { %v119_v21 = vadd.f32 %v118_v16, %v797_v14  ;;  %v883_v16 = vld [vmem:[#allocation5 + $0x78] sm:$0xff] }
  0x35   :  { %v318_v44 = vadd.f32 %v317_v40, %v835_v38 }
  0x36   :  { %v120_v25 = vadd.f32 %v119_v21, %v806_v19 }
  0x37   :  { %v319_v48 = vadd.f32 %v318_v44, %v841_v42  ;;  %v903_v44 = vld [vmem:[#allocation2 + $0xc8] sm:$0xff] }
  0x38   :  { %v121_v29 = vadd.f32 %v120_v25, %v813_v23  ;;  %v889_v25 = vld [vmem:[#allocation5 + $0x80] sm:$0xff] }
  0x39   :  { %v320_v52 = vadd.f32 %v319_v48, %v847_v46 }
  0x3a   :  { %v122_v33 = vadd.f32 %v121_v29, %v819_v27 }
  0x3b   :  { %v321_v56 = vadd.f32 %v320_v52, %v853_v50  ;;  %v909_v52 = vld [vmem:[#allocation2 + $0xd0] sm:$0xff] }
  0x3c   :  { %v123_v37 = vadd.f32 %v122_v33, %v825_v31  ;;  %v895_v33 = vld [vmem:[#allocation5 + $0x88] sm:$0xff] }
  0x3d   :  { %v322_v60 = vadd.f32 %v321_v56, %v859_v54 }
  0x3e   :  { %v124_v41 = vadd.f32 %v123_v37, %v831_v35 }
  0x3f   :  { %v323_v3 = vadd.f32 %v322_v60, %v865_v58  ;;  %v915_v60 = vld [vmem:[#allocation2 + $0xd8] sm:$0xff] }
  0x40   :  { %v125_v45 = vadd.f32 %v124_v41, %v837_v39  ;;  %v901_v41 = vld [vmem:[#allocation5 + $0x90] sm:$0xff]  ;;  %1758 = vst [vmem:[#allocation12_spill] sm:$0xff] %v915_v60 }
  0x41   :  { %v324_v11 = vadd.f32 %v323_v3, %v871_v62 }
  0x42   :  { %v126_v49 = vadd.f32 %v125_v45, %v843_v43 }
  0x43   :  { %v325_v21 = vadd.f32 %v324_v11, %v877_v7  ;;  %v921_v11 = vld [vmem:[#allocation2 + $0xe0] sm:$0xff] }
  0x44   :  { %v127_v53 = vadd.f32 %v126_v49, %v849_v47  ;;  %v907_v49 = vld [vmem:[#allocation5 + $0x98] sm:$0xff]  ;;  %1760 = vst [vmem:[#allocation14_spill] sm:$0xff] %v921_v11 }
  0x45   :  { %v326_v29 = vadd.f32 %v325_v21, %v883_v16 }
  0x46   :  { %v128_v57 = vadd.f32 %v127_v53, %v855_v51 }
  0x47   :  { %v327_v37 = vadd.f32 %v326_v29, %v889_v25  ;;  %v927_v29 = vld [vmem:[#allocation2 + $0xe8] sm:$0xff] }
  0x48   :  { %v129_v61 = vadd.f32 %v128_v57, %v861_v55  ;;  %v913_v57 = vld [vmem:[#allocation5 + $0xa0] sm:$0xff]  ;;  %1762 = vst [vmem:[#allocation16_spill] sm:$0xff] %v927_v29 }
  0x49   :  { %v328_v45 = vadd.f32 %v327_v37, %v895_v33  ;;  %1757 = vst [vmem:[#allocation11_spill] sm:$0xff] %v913_v57 }
  0x4a   :  { %v130_v5 = vadd.f32 %v129_v61, %v867_v59 }
  0x4b   :  { %v329_v53 = vadd.f32 %v328_v45, %v901_v41  ;;  %v933_v45 = vld [vmem:[#allocation2 + $0xf0] sm:$0xff] }
  0x4c   :  { %v131_v13 = vadd.f32 %v130_v5, %v873_v63  ;;  %v919_v5 = vld [vmem:[#allocation5 + $0xa8] sm:$0xff]  ;;  %1764 = vst [vmem:[#allocation18_spill] sm:$0xff] %v933_v45 }
  0x4d   :  { %v330_v61 = vadd.f32 %v329_v53, %v907_v49  ;;  %1759 = vst [vmem:[#allocation13_spill] sm:$0xff] %v919_v5 }
  0x4e   :  { %v132_v24 = vadd.f32 %v131_v13, %v879_v9 }
  0x4f   :  { %v331_v13 = vadd.f32 %v330_v61, %v913_v57  ;;  %v939_v61 = vld [vmem:[#allocation2 + $0xf8] sm:$0xff] }
  0x50   :  { %v133_v32 = vadd.f32 %v132_v24, %v885_v20  ;;  %v925_v24 = vld [vmem:[#allocation5 + $0xb0] sm:$0xff]  ;;  %1766 = vst [vmem:[#allocation20_spill] sm:$0xff] %v939_v61  ;;  %v943_v57 = vld [vmem:[#allocation5 + $0xc8] sm:$0xff] }
  0x51   :  { %1761 = vst [vmem:[#allocation15_spill] sm:$0xff] %v925_v24  ;;  %1767 = vst [vmem:[#allocation21_spill] sm:$0xff] %v943_v57 }
  0x52   :  { %v134_v40 = vadd.f32 %v133_v32, %v891_v28  ;;  %v332_v32 = vadd.f32 %v331_v13, %v919_v5  ;;  %v945_v13 = vld [vmem:[#allocation2 + $0x100] sm:$0xff] }
  0x53   :  { %1768 = vst [vmem:[#allocation22_spill] sm:$0xff] %v945_v13  ;;  %v949_v5 = vld [vmem:[#allocation5 + $0xd0] sm:$0xff] }
  0x54   :  { %v135_v48 = vadd.f32 %v134_v40, %v897_v36  ;;  %v931_v40 = vld [vmem:[#allocation5 + $0xb8] sm:$0xff]  ;;  %1769 = vst [vmem:[#allocation23_spill] sm:$0xff] %v949_v5 }
  0x55   :  { %1763 = vst [vmem:[#allocation17_spill] sm:$0xff] %v931_v40 }
  0x56   :  { %v136_v56 = vadd.f32 %v135_v48, %v903_v44  ;;  %v333_v48 = vadd.f32 %v332_v32, %v925_v24  ;;  %v951_v32 = vld [vmem:[#allocation2 + $0x108] sm:$0xff] }
  0x57   :  { %1770 = vst [vmem:[#allocation24_spill] sm:$0xff] %v951_v32  ;;  %v955_v24 = vld [vmem:[#allocation5 + $0xd8] sm:$0xff] }
  0x58   :  { %v137_v3 = vadd.f32 %v136_v56, %v909_v52  ;;  %v937_v56 = vld [vmem:[#allocation5 + $0xc0] sm:$0xff]  ;;  %1771 = vst [vmem:[#allocation25_spill] sm:$0xff] %v955_v24 }
  0x59   :  { %1765 = vst [vmem:[#allocation19_spill] sm:$0xff] %v937_v56 }
  0x5a   :  { %v138_v21 = vadd.f32 %v137_v3, %v915_v60  ;;  %v334_v3 = vadd.f32 %v333_v48, %v931_v40  ;;  %v957_v48 = vld [vmem:[#allocation2 + $0x110] sm:$0xff] }
  0x5b   :  { %1772 = vst [vmem:[#allocation26_spill] sm:$0xff] %v957_v48  ;;  %v961_v40 = vld [vmem:[#allocation5 + $0xe0] sm:$0xff] }
  0x5c   :  { %v139_v37 = vadd.f32 %v138_v21, %v921_v11  ;;  %v335_v21 = vadd.f32 %v334_v3, %v937_v56  ;;  %1773 = vst [vmem:[#allocation27_spill] sm:$0xff] %v961_v40  ;;  %v963_v3 = vld [vmem:[#allocation2 + $0x118] sm:$0xff]  ;;  %v984_v56 = vld [vmem:[#allocation5 + $0x100] sm:$0xff] }
  0x5d   :  { %1774 = vst [vmem:[#allocation28_spill] sm:$0xff] %v963_v3  ;;  %1777 = vst [vmem:[#allocation31_spill] sm:$0xff] %v984_v56 }
  0x5e   :  { %v140_v53 = vadd.f32 %v139_v37, %v927_v29  ;;  %v336_v37 = vadd.f32 %v335_v21, %v943_v57 }
  0x60   :  { %v141_v60 = vadd.f32 %v140_v53, %v933_v45  ;;  %v337_v53 = vadd.f32 %v336_v37, %v949_v5  ;;  %v981_v5 = vld [vmem:[#allocation5 + $0xf8] sm:$0xff] }
  0x61   :  { %1776 = vst [vmem:[#allocation30_spill] sm:$0xff] %v981_v5 }
  0x62   :  { %v142_v11 = vadd.f32 %v141_v60, %v939_v61  ;;  %v338_v60 = vadd.f32 %v337_v53, %v955_v24  ;;  %v966_v61 = vld [vmem:[#allocation2 + $0x128] sm:$0xff] }
  0x63   :  { %1775 = vst [vmem:[#allocation29_spill] sm:$0xff] %v966_v61 }
  0x64   :  { %v143_v29 = vadd.f32 %v142_v11, %v945_v13  ;;  %v969_v11 = vld [vmem:[#allocation5 + $0xe8] sm:$0xff]  ;;  %v971_v13 = vld [vmem:[#allocation2 + $0x120] sm:$0xff]  ;;  %v339_v57 = vadd.f32 %v338_v60, %v961_v40 }
  0x65   :  { %v990_v40 = vld [vmem:[#allocation5 + $0x110] sm:$0xff] }
  0x66   :  { %v144_v45 = vadd.f32 %v143_v29, %v951_v32  ;;  %v975_v29 = vld [vmem:[#allocation5 + $0xf0] sm:$0xff]  ;;  %v149_v32 = vsel %vm148_vm0, %v966_v61, 0.0  ;;  %v340_v53 = vadd.f32 %v339_v57, %v969_v11  ;;  %v993_v61 = vld [vmem:[#allocation5 + $0x118] sm:$0xff] }
  0x68   :  { %v145_v21 = vadd.f32 %v144_v45, %v957_v48  ;;  %v341_v45 = vadd.f32 %v340_v53, %v975_v29 }
  0x6a   :  { %v146_v37 = vadd.f32 %v145_v21, %v963_v3  ;;  %v342_v60 = vadd.f32 %v341_v45, %v981_v5  ;;  %v987_v21 = vld [vmem:[#allocation5 + $0x108] sm:$0xff] }
  0x6c   :  { %v147_v24 = vadd.f32 %v146_v37, %v971_v13  ;;  %v343_v3 = vadd.f32 %v342_v60, %v984_v56  ;;  %v995_v37 = vld [vmem:[#allocation5 + $0x128] sm:$0xff] }
  0x6e   :  { %v150_v48 = vadd.f32 %v149_v32, %v147_v24  ;;  %v344_v57 = vadd.f32 %v343_v3, %v987_v21  ;;  %v998_v24 = vld [vmem:[#allocation5 + $0x120] sm:$0xff] }
  0x6f   :  { %1778 = vst [vmem:[#allocation32_spill] sm:$0xff] %v998_v24 }
  0x70   :  { %151 = vadd.xlane.f32.xlu0 %v150_v48  ;;  %v345_v53 = vadd.f32 %v344_v57, %v990_v40  ;;  %v348_v48 = vsel %vm148_vm0, %v995_v37, 0.0 }
  0x72   :  { %v346_v32 = vadd.f32 %v345_v53, %v993_v61 }
  0x74   :  { %v347_v45 = vadd.f32 %v346_v32, %v998_v24 }
  0x76   :  { %v349_v60 = vadd.f32 %v348_v48, %v347_v45 }
  0x78   :  { %350 = vadd.xlane.f32.xlu0 %v349_v60 }
  0xfd   :  { %v152_v56 = vpop.xlane.xlu0 %151 }
  0xfe   :  { %v1004_v5 = vmul.f32 0.00020833334, %v152_v56 }
 0x100   :  { %v1008_v3 = vsub.f32 %v774_v0, %v1004_v5  ;;  %v1012_v57 = vsub.f32 %v776_v1, %v1004_v5  ;;  %v1016_v53 = vsub.f32 %v778_v2, %v1004_v5  ;;  %v1024_v45 = vsub.f32 %v782_v4, %v1004_v5 }
 0x101   :  { %v1028_v0 = vsub.f32 %v785_v6, %v1004_v5  ;;  %v1042_v4 = vsub.f32 %v791_v10, %v1004_v5 }
 0x102   :  { %1779 = vst [vmem:[#allocation33_spill] sm:$0xff] %v1008_v3  ;;  %1780 = vst [vmem:[#allocation34_spill] sm:$0xff] %v1012_v57  ;;  %v193_v32 = vmul.f32 %v1008_v3, %v1008_v3  ;;  %v194_v48 = vmul.f32 %v1012_v57, %v1012_v57  ;;  %v195_v2 = vmul.f32 %v1016_v53, %v1016_v53 }
 0x103   :  { %v1036_v3 = vsub.f32 %v788_v8, %v1004_v5  ;;  %v196_v57 = vmul.f32 %v1024_v45, %v1024_v45  ;;  %1782 = vst [vmem:[#allocation36_spill] sm:$0xff] %v1042_v4  ;;  %v197_v8 = vmul.f32 %v1028_v0, %v1028_v0 }
 0x104   :  { %v231_v60 = vadd.f32 %v194_v48, %v193_v32  ;;  %v1056_v48 = vsub.f32 %v794_v12, %v1004_v5 }
 0x105   :  { %v351_v56 = vpop.xlane.xlu0 %350  ;;  %1781 = vst [vmem:[#allocation35_spill] sm:$0xff] %v1036_v3  ;;  %v198_v10 = vmul.f32 %v1036_v3, %v1036_v3 }
 0x106   :  { %v1030_v1 = vmul.f32 0.00020833334, %v351_v56  ;;  %v232_v24 = vadd.f32 %v231_v60, %v195_v2  ;;  %1783 = vst [vmem:[#allocation37_spill] sm:$0xff] %v1056_v48 }
 0x108   :  { %v1046_v6 = vsub.f32 %v799_v15, %v1030_v1  ;;  %v1050_v56 = vsub.f32 %v802_v17, %v1030_v1  ;;  %v233_v32 = vadd.f32 %v232_v24, %v196_v57  ;;  %v1062_v15 = vsub.f32 %v797_v14, %v1004_v5 }
 0x109   :  { %v199_v17 = vmul.f32 %v1042_v4, %v1042_v4  ;;  %v1068_v60 = vsub.f32 %v804_v18, %v1030_v1  ;;  %v1080_v14 = vsub.f32 %v811_v22, %v1030_v1  ;;  %v1092_v4 = vsub.f32 %v817_v26, %v1030_v1 }
 0x10a   :  { %v234_v2 = vadd.f32 %v233_v32, %v197_v8  ;;  %v391_v12 = vmul.f32 %v1046_v6, %v1046_v6  ;;  %v392_v57 = vmul.f32 %v1050_v56, %v1050_v56  ;;  %v1076_v8 = vsub.f32 %v806_v19, %v1004_v5 }
 0x10b   :  { %v200_v32 = vmul.f32 %v1056_v48, %v1056_v48  ;;  %v393_v22 = vmul.f32 %v1068_v60, %v1068_v60  ;;  %v1098_v48 = vsub.f32 %v819_v27, %v1004_v5  ;;  %v394_v26 = vmul.f32 %v1080_v14, %v1080_v14 }
 0x10c   :  { %v235_v24 = vadd.f32 %v234_v2, %v198_v10  ;;  %v1086_v10 = vsub.f32 %v813_v23, %v1004_v5  ;;  %v201_v2 = vmul.f32 %v1062_v15, %v1062_v15  ;;  %v429_v3 = vadd.f32 %v392_v57, %v391_v12 }
 0x10d   :  { %v202_v23 = vmul.f32 %v1076_v8, %v1076_v8  ;;  %v1116_v12 = vsub.f32 %v829_v34, %v1030_v1 }
 0x10e   :  { %v236_v18 = vadd.f32 %v235_v24, %v199_v17  ;;  %v1104_v17 = vsub.f32 %v823_v30, %v1030_v1  ;;  %v203_v27 = vmul.f32 %v1086_v10, %v1086_v10  ;;  %v395_v30 = vmul.f32 %v1092_v4, %v1092_v4 }
 0x110   :  { %v237_v19 = vadd.f32 %v236_v18, %v200_v32  ;;  %v430_v32 = vadd.f32 %v429_v3, %v393_v22  ;;  %v1110_v18 = vsub.f32 %v825_v31, %v1004_v5  ;;  %v204_v31 = vmul.f32 %v1098_v48, %v1098_v48 }
 0x111   :  { %v1128_v3 = vsub.f32 %v835_v38, %v1030_v1  ;;  %v396_v34 = vmul.f32 %v1104_v17, %v1104_v17  ;;  %v397_v38 = vmul.f32 %v1116_v12, %v1116_v12 }
 0x112   :  { %v238_v24 = vadd.f32 %v237_v19, %v201_v2  ;;  %v431_v2 = vadd.f32 %v430_v32, %v394_v26  ;;  %v1122_v19 = vsub.f32 %v831_v35, %v1004_v5  ;;  %v205_v35 = vmul.f32 %v1110_v18, %v1110_v18 }
 0x113   :  { %v1140_v26 = vsub.f32 %v841_v42, %v1030_v1  ;;  %v398_v42 = vmul.f32 %v1128_v3, %v1128_v3 }
 0x114   :  { %v239_v57 = vadd.f32 %v238_v24, %v202_v23  ;;  %v432_v23 = vadd.f32 %v431_v2, %v395_v30  ;;  %v1134_v24 = vsub.f32 %v837_v39, %v1004_v5  ;;  %v1150_v39 = vsub.f32 %v847_v46, %v1030_v1 }
 0x115   :  { %v206_v30 = vmul.f32 %v1122_v19, %v1122_v19 }
 0x116   :  { %v240_v22 = vadd.f32 %v239_v57, %v203_v27  ;;  %1784 = vst [vmem:[#allocation38_spill] sm:$0xff] %v1134_v24  ;;  %v433_v27 = vadd.f32 %v432_v23, %v396_v34  ;;  %v1146_v57 = vsub.f32 %v843_v43, %v1004_v5  ;;  %v1162_v43 = vsub.f32 %v853_v50, %v1030_v1 }
 0x117   :  { %v207_v46 = vmul.f32 %v1134_v24, %v1134_v24  ;;  %v399_v23 = vmul.f32 %v1140_v26, %v1140_v26 }
 0x118   :  { %v241_v32 = vadd.f32 %v240_v22, %v204_v31  ;;  %1785 = vst [vmem:[#allocation39_spill] sm:$0xff] %v1146_v57  ;;  %v434_v31 = vadd.f32 %v433_v27, %v397_v38  ;;  %v1158_v22 = vsub.f32 %v849_v47, %v1004_v5  ;;  %v1174_v47 = vsub.f32 %v859_v54, %v1030_v1 }
 0x119   :  { %v208_v50 = vmul.f32 %v1146_v57, %v1146_v57  ;;  %v400_v27 = vmul.f32 %v1150_v39, %v1150_v39 }
 0x11a   :  { %v242_v2 = vadd.f32 %v241_v32, %v205_v35  ;;  %1786 = vst [vmem:[#allocation40_spill] sm:$0xff] %v1158_v22  ;;  %v435_v35 = vadd.f32 %v434_v31, %v398_v42  ;;  %v1170_v32 = vsub.f32 %v855_v51, %v1004_v5  ;;  %v1186_v51 = vsub.f32 %v865_v58, %v1030_v1 }
 0x11b   :  { %v209_v54 = vmul.f32 %v1158_v22, %v1158_v22  ;;  %v401_v31 = vmul.f32 %v1162_v43, %v1162_v43 }
 0x11c   :  { %v243_v34 = vadd.f32 %v242_v2, %v206_v30  ;;  %1787 = vst [vmem:[#allocation41_spill] sm:$0xff] %v1170_v32  ;;  %v436_v30 = vadd.f32 %v435_v35, %v399_v23  ;;  %v1182_v2 = vsub.f32 %v861_v55, %v1004_v5  ;;  %v1198_v55 = vsub.f32 %v871_v62, %v1030_v1 }
 0x11d   :  { %v210_v58 = vmul.f32 %v1170_v32, %v1170_v32  ;;  %v402_v35 = vmul.f32 %v1174_v47, %v1174_v47 }
 0x11e   :  { %v244_v38 = vadd.f32 %v243_v34, %v207_v46  ;;  %1788 = vst [vmem:[#allocation42_spill] sm:$0xff] %v1182_v2  ;;  %v437_v46 = vadd.f32 %v436_v30, %v400_v27  ;;  %v1194_v34 = vsub.f32 %v867_v59, %v1004_v5  ;;  %v1210_v59 = vsub.f32 %v877_v7, %v1030_v1 }
 0x11f   :  { %v211_v62 = vmul.f32 %v1182_v2, %v1182_v2  ;;  %v403_v30 = vmul.f32 %v1186_v51, %v1186_v51 }
 0x120   :  { %v245_v42 = vadd.f32 %v244_v38, %v208_v50  ;;  %1789 = vst [vmem:[#allocation43_spill] sm:$0xff] %v1194_v34  ;;  %v438_v50 = vadd.f32 %v437_v46, %v401_v31  ;;  %v1206_v38 = vsub.f32 %v873_v63, %v1004_v5  ;;  %v1222_v63 = vsub.f32 %v883_v16, %v1030_v1 }
 0x121   :  { %v212_v7 = vmul.f32 %v1194_v34, %v1194_v34  ;;  %v404_v46 = vmul.f32 %v1198_v55, %v1198_v55 }
 0x122   :  { %v246_v23 = vadd.f32 %v245_v42, %v209_v54  ;;  %1790 = vst [vmem:[#allocation44_spill] sm:$0xff] %v1206_v38  ;;  %v439_v54 = vadd.f32 %v438_v50, %v402_v35  ;;  %v1218_v42 = vsub.f32 %v879_v9, %v1004_v5  ;;  %1792 = vst [vmem:[#allocation46_spill] sm:$0xff] %v1222_v63 }
 0x123   :  { %v1234_v9 = vsub.f32 %v889_v25, %v1030_v1  ;;  %v213_v16 = vmul.f32 %v1206_v38, %v1206_v38  ;;  %v405_v50 = vmul.f32 %v1210_v59, %v1210_v59 }
 0x124   :  { %v247_v27 = vadd.f32 %v246_v23, %v210_v58  ;;  %1791 = vst [vmem:[#allocation45_spill] sm:$0xff] %v1218_v42  ;;  %v440_v58 = vadd.f32 %v439_v54, %v403_v30  ;;  %v1230_v23 = vsub.f32 %v885_v20, %v1004_v5  ;;  %v1246_v20 = vsub.f32 %v895_v33, %v1030_v1 }
 0x125   :  { %1794 = vst [vmem:[#allocation48_spill] sm:$0xff] %v1234_v9  ;;  %v214_v25 = vmul.f32 %v1218_v42, %v1218_v42  ;;  %v406_v54 = vmul.f32 %v1222_v63, %v1222_v63 }
 0x126   :  { %v248_v31 = vadd.f32 %v247_v27, %v211_v62  ;;  %1793 = vst [vmem:[#allocation47_spill] sm:$0xff] %v1230_v23  ;;  %v441_v62 = vadd.f32 %v440_v58, %v404_v46  ;;  %v1242_v27 = vsub.f32 %v891_v28, %v1004_v5  ;;  %1796 = vst [vmem:[#allocation50_spill] sm:$0xff] %v1246_v20 }
 0x127   :  { %v1258_v28 = vsub.f32 %v901_v41, %v1030_v1  ;;  %v215_v33 = vmul.f32 %v1230_v23, %v1230_v23  ;;  %v407_v58 = vmul.f32 %v1234_v9, %v1234_v9 }
 0x128   :  { %v249_v35 = vadd.f32 %v248_v31, %v212_v7  ;;  %1795 = vst [vmem:[#allocation49_spill] sm:$0xff] %v1242_v27  ;;  %v442_v7 = vadd.f32 %v441_v62, %v405_v50  ;;  %v1254_v31 = vsub.f32 %v897_v36, %v1004_v5  ;;  %v1270_v36 = vsub.f32 %v907_v49, %v1030_v1 }
 0x129   :  { %1798 = vst [vmem:[#allocation52_spill] sm:$0xff] %v1258_v28  ;;  %v216_v41 = vmul.f32 %v1242_v27, %v1242_v27  ;;  %v408_v62 = vmul.f32 %v1246_v20, %v1246_v20  ;;  %v409_v27 = vmul.f32 %v1258_v28, %v1258_v28  ;;  %v387_v20 = vsub.f32 %v990_v40, %v1030_v1 }
 0x12a   :  { %v250_v30 = vadd.f32 %v249_v35, %v213_v16  ;;  %1797 = vst [vmem:[#allocation51_spill] sm:$0xff] %v1254_v31  ;;  %v443_v16 = vadd.f32 %v442_v7, %v406_v54  ;;  %v1266_v35 = vsub.f32 %v903_v44, %v1004_v5  ;;  %1800 = vst [vmem:[#allocation54_spill] sm:$0xff] %v1270_v36  ;;  %v1802_v54 = vld [vmem:[#allocation11_spill] sm:$0xff] }
 0x12b   :  { %v1282_v44 = vsub.f32 %v1802_v54, %v1030_v1  ;;  %v217_v49 = vmul.f32 %v1254_v31, %v1254_v31  ;;  %v410_v31 = vmul.f32 %v1270_v36, %v1270_v36 }
 0x12c   :  { %v251_v46 = vadd.f32 %v250_v30, %v214_v25  ;;  %1799 = vst [vmem:[#allocation53_spill] sm:$0xff] %v1266_v35  ;;  %v444_v25 = vadd.f32 %v443_v16, %v407_v58  ;;  %v1278_v30 = vsub.f32 %v909_v52, %v1004_v5  ;;  %v1806_v58 = vld [vmem:[#allocation13_spill] sm:$0xff]  ;;  %v218_v16 = vmul.f32 %v1266_v35, %v1266_v35 }
 0x12d   :  { %1803 = vst [vmem:[#allocation11_spill] sm:$0xff] %v1282_v44  ;;  %v1294_v52 = vsub.f32 %v1806_v58, %v1030_v1  ;;  %v411_v35 = vmul.f32 %v1282_v44, %v1282_v44 }
 0x12e   :  { %v252_v50 = vadd.f32 %v251_v46, %v215_v33  ;;  %1801 = vst [vmem:[#allocation55_spill] sm:$0xff] %v1278_v30  ;;  %v445_v33 = vadd.f32 %v444_v25, %v408_v62  ;;  %v1804_v46 = vld [vmem:[#allocation12_spill] sm:$0xff]  ;;  %v1809_v62 = vld [vmem:[#allocation15_spill] sm:$0xff] }
 0x12f   :  { %v1290_v23 = vsub.f32 %v1804_v46, %v1004_v5  ;;  %1807 = vst [vmem:[#allocation13_spill] sm:$0xff] %v1294_v52  ;;  %v1306_v25 = vsub.f32 %v1809_v62, %v1030_v1  ;;  %v219_v46 = vmul.f32 %v1278_v30, %v1278_v30  ;;  %v412_v30 = vmul.f32 %v1294_v52, %v1294_v52 }
 0x130   :  { %v253_v7 = vadd.f32 %v252_v50, %v216_v41  ;;  %v446_v41 = vadd.f32 %v445_v33, %v409_v27  ;;  %v1808_v50 = vld [vmem:[#allocation14_spill] sm:$0xff]  ;;  %v1812_v27 = vld [vmem:[#allocation17_spill] sm:$0xff] }
 0x131   :  { %1805 = vst [vmem:[#allocation12_spill] sm:$0xff] %v1290_v23  ;;  %v1302_v42 = vsub.f32 %v1808_v50, %v1004_v5  ;;  %1810 = vst [vmem:[#allocation14_spill] sm:$0xff] %v1306_v25  ;;  %v1318_v33 = vsub.f32 %v1812_v27, %v1030_v1  ;;  %v220_v50 = vmul.f32 %v1290_v23, %v1290_v23 }
 0x132   :  { %v254_v54 = vadd.f32 %v253_v7, %v217_v49  ;;  %v447_v49 = vadd.f32 %v446_v41, %v410_v31  ;;  %v1811_v7 = vld [vmem:[#allocation16_spill] sm:$0xff]  ;;  %v1815_v31 = vld [vmem:[#allocation19_spill] sm:$0xff]  ;;  %v413_v23 = vmul.f32 %v1306_v25, %v1306_v25 }
 0x133   :  { %v1314_v38 = vsub.f32 %v1811_v7, %v1004_v5  ;;  %1813 = vst [vmem:[#allocation15_spill] sm:$0xff] %v1318_v33  ;;  %v1330_v41 = vsub.f32 %v1815_v31, %v1030_v1  ;;  %v221_v7 = vmul.f32 %v1302_v42, %v1302_v42  ;;  %v414_v34 = vmul.f32 %v1318_v33, %v1318_v33 }
 0x134   :  { %v255_v58 = vadd.f32 %v254_v54, %v218_v16  ;;  %v448_v16 = vadd.f32 %v447_v49, %v411_v35  ;;  %v1814_v54 = vld [vmem:[#allocation18_spill] sm:$0xff]  ;;  %v1818_v35 = vld [vmem:[#allocation21_spill] sm:$0xff] }
 0x135   :  { %v1326_v44 = vsub.f32 %v1814_v54, %v1004_v5  ;;  %1816 = vst [vmem:[#allocation16_spill] sm:$0xff] %v1330_v41  ;;  %v1342_v49 = vsub.f32 %v1818_v35, %v1030_v1  ;;  %v222_v54 = vmul.f32 %v1314_v38, %v1314_v38  ;;  %v415_v36 = vmul.f32 %v1330_v41, %v1330_v41 }
 0x136   :  { %v256_v62 = vadd.f32 %v255_v58, %v219_v46  ;;  %v449_v46 = vadd.f32 %v448_v16, %v412_v30  ;;  %v1817_v58 = vld [vmem:[#allocation20_spill] sm:$0xff]  ;;  %v1821_v30 = vld [vmem:[#allocation23_spill] sm:$0xff] }
 0x137   :  { %v1338_v52 = vsub.f32 %v1817_v58, %v1004_v5  ;;  %1819 = vst [vmem:[#allocation17_spill] sm:$0xff] %v1342_v49  ;;  %v1354_v16 = vsub.f32 %v1821_v30, %v1030_v1  ;;  %v223_v58 = vmul.f32 %v1326_v44, %v1326_v44  ;;  %v416_v2 = vmul.f32 %v1342_v49, %v1342_v49 }
 0x138   :  { %v257_v27 = vadd.f32 %v256_v62, %v220_v50  ;;  %v450_v50 = vadd.f32 %v449_v46, %v413_v23  ;;  %v1820_v62 = vld [vmem:[#allocation22_spill] sm:$0xff]  ;;  %v1824_v23 = vld [vmem:[#allocation25_spill] sm:$0xff] }
 0x139   :  { %v1350_v25 = vsub.f32 %v1820_v62, %v1004_v5  ;;  %1822 = vst [vmem:[#allocation18_spill] sm:$0xff] %v1354_v16  ;;  %v1366_v46 = vsub.f32 %v1824_v23, %v1030_v1  ;;  %v224_v62 = vmul.f32 %v1338_v52, %v1338_v52  ;;  %v417_v28 = vmul.f32 %v1354_v16, %v1354_v16  ;;  %v1831_v16 = vld [vmem:[#allocation31_spill] sm:$0xff] }
 0x13a   :  { %v258_v31 = vadd.f32 %v257_v27, %v221_v7  ;;  %v451_v7 = vadd.f32 %v450_v50, %v414_v34  ;;  %v1823_v27 = vld [vmem:[#allocation24_spill] sm:$0xff]  ;;  %v1827_v34 = vld [vmem:[#allocation27_spill] sm:$0xff]  ;;  %v1422_v32 = vsub.f32 %v1831_v16, %v1030_v1 }
 0x13b   :  { %v1362_v33 = vsub.f32 %v1823_v27, %v1004_v5  ;;  %1825 = vst [vmem:[#allocation19_spill] sm:$0xff] %v1366_v46  ;;  %v1378_v50 = vsub.f32 %v1827_v34, %v1030_v1  ;;  %v225_v27 = vmul.f32 %v1350_v25, %v1350_v25  ;;  %v418_v34 = vmul.f32 %v1366_v46, %v1366_v46 }
 0x13c   :  { %v259_v35 = vadd.f32 %v258_v31, %v222_v54  ;;  %v452_v54 = vadd.f32 %v451_v7, %v415_v36  ;;  %v1826_v31 = vld [vmem:[#allocation26_spill] sm:$0xff]  ;;  %v1390_v36 = vsub.f32 %v969_v11, %v1030_v1  ;;  %v1406_v11 = vsub.f32 %v975_v29, %v1030_v1 }
 0x13d   :  { %v1374_v41 = vsub.f32 %v1826_v31, %v1004_v5  ;;  %v226_v7 = vmul.f32 %v1362_v33, %v1362_v33 }
 0x13e   :  { %v260_v30 = vadd.f32 %v259_v35, %v223_v58  ;;  %v453_v58 = vadd.f32 %v452_v54, %v416_v2  ;;  %v1828_v35 = vld [vmem:[#allocation28_spill] sm:$0xff]  ;;  %v1829_v2 = vld [vmem:[#allocation29_spill] sm:$0xff]  ;;  %v420_v29 = vmul.f32 %v1390_v36, %v1390_v36 }
 0x13f   :  { %v1386_v49 = vsub.f32 %v1828_v35, %v1004_v5  ;;  %v1402_v54 = vsub.f32 %v1829_v2, %v1004_v5  ;;  %v227_v35 = vmul.f32 %v1374_v41, %v1374_v41 }
 0x140   :  { %v261_v23 = vadd.f32 %v260_v30, %v224_v62  ;;  %v454_v62 = vadd.f32 %v453_v58, %v417_v28  ;;  %v1398_v30 = vsub.f32 %v971_v13, %v1004_v5  ;;  %v1830_v58 = vld [vmem:[#allocation30_spill] sm:$0xff] }
 0x141   :  { %v1414_v13 = vsub.f32 %v1830_v58, %v1030_v1  ;;  %v228_v5 = vmul.f32 %v1386_v49, %v1386_v49 }
 0x142   :  { %v262_v31 = vadd.f32 %v261_v23, %v225_v27  ;;  %v419_v23 = vmul.f32 %v1378_v50, %v1378_v50  ;;  %v455_v28 = vadd.f32 %v454_v62, %v418_v34  ;;  %v421_v62 = vmul.f32 %v1406_v11, %v1406_v11 }
 0x144   :  { %v263_v27 = vadd.f32 %v262_v31, %v226_v7  ;;  %v456_v46 = vadd.f32 %v455_v28, %v419_v23  ;;  %v230_v7 = vmul.f32 %v1402_v54, %v1402_v54  ;;  %v229_v31 = vmul.f32 %v1398_v30, %v1398_v30 }
 0x145   :  { %v422_v23 = vmul.f32 %v1414_v13, %v1414_v13 }
 0x146   :  { %v264_v2 = vadd.f32 %v263_v27, %v227_v35  ;;  %v457_v58 = vadd.f32 %v456_v46, %v420_v29  ;;  %v386_v35 = vsub.f32 %v987_v21, %v1030_v1  ;;  %v267_v28 = vsel %vm148_vm0, %v230_v7, 0.0 }
 0x147   :  { %v388_v46 = vsub.f32 %v993_v61, %v1030_v1 }
 0x148   :  { %v265_v34 = vadd.f32 %v264_v2, %v228_v5  ;;  %v458_v16 = vadd.f32 %v457_v58, %v421_v62  ;;  %v423_v5 = vmul.f32 %v1422_v32, %v1422_v32  ;;  %v424_v21 = vmul.f32 %v386_v35, %v386_v35 }
 0x149   :  { %v425_v62 = vmul.f32 %v387_v20, %v387_v20  ;;  %v426_v40 = vmul.f32 %v388_v46, %v388_v46 }
 0x14a   :  { %v266_v27 = vadd.f32 %v265_v34, %v229_v31  ;;  %v459_v2 = vadd.f32 %v458_v16, %v422_v23  ;;  %v390_v31 = vsub.f32 %v995_v37, %v1030_v1  ;;  %v1832_v34 = vld [vmem:[#allocation32_spill] sm:$0xff] }
 0x14b   :  { %v389_v7 = vsub.f32 %v1832_v34, %v1030_v1 }
 0x14c   :  { %v268_v22 = vadd.f32 %v267_v28, %v266_v27  ;;  %v460_v29 = vadd.f32 %v459_v2, %v423_v5  ;;  %v428_v28 = vmul.f32 %v390_v31, %v390_v31 }
 0x14d   :  { %v427_v9 = vmul.f32 %v389_v7, %v389_v7 }
 0x14e   :  { %269 = vadd.xlane.f32.xlu1 %v268_v22  ;;  %v461_v58 = vadd.f32 %v460_v29, %v424_v21  ;;  %v465_v16 = vsel %vm148_vm0, %v428_v28, 0.0  ;;  %v1833_v29 = vld [vmem:[#allocation33_spill] sm:$0xff] }
 0x150   :  { %v462_v27 = vadd.f32 %v461_v58, %v425_v62 }
 0x152   :  { %v463_v57 = vadd.f32 %v462_v27, %v426_v40 }
 0x154   :  { %v464_v23 = vadd.f32 %v463_v57, %v427_v9  ;;  %v1834_v57 = vld [vmem:[#allocation34_spill] sm:$0xff] }
 0x156   :  { %v466_v61 = vadd.f32 %v465_v16, %v464_v23 }
 0x158   :  { %467 = vadd.xlane.f32.xlu1 %v466_v61 }
 0x1db   :  { %v270_v22 = vpop.xlane.xlu1 %269 }
 0x1dc   :  { %v271_v5 = vmul.f32 0.00020833334, %v270_v22 }
 0x1de   :  { %v272_v37 = vadd.f32 1e-05, %v271_v5 }
 0x1e0   :  { %656 = vrsqrt.f32 %v272_v37 }
 0x1e5   :  { %v468_v2 = vpop.xlane.xlu1 %467 }
 0x1e6   :  { %v469_v63 = vmul.f32 0.00020833334, %v468_v2 }
 0x1e8   :  { %v470_v24 = vadd.f32 1e-05, %v469_v63 }
 0x1ea   :  { %658 = vrsqrt.f32 %v470_v24  ;;  %v1446_v1 = vpop.eup %656 }
 0x1eb   :  { %v274_v34 = vmul.f32 %v1446_v1, %v1833_v29  ;;  %v275_v9 = vmul.f32 %v1446_v1, %v1834_v57  ;;  %v276_v62 = vmul.f32 %v1446_v1, %v1016_v53  ;;  %v277_v58 = vmul.f32 %v1446_v1, %v1024_v45 }
 0x1ec   :  { %v278_v63 = vmul.f32 %v1446_v1, %v1028_v0  ;;  %v1462_v24 = vmul.f32 %v1446_v1, %v1302_v42  ;;  %v1466_v40 = vmul.f32 %v1446_v1, %v1314_v38  ;;  %v1470_v27 = vmul.f32 %v1446_v1, %v1326_v44 }
 0x1ed   :  { %v1474_v53 = vmul.f32 %v1446_v1, %v1338_v52  ;;  %v1478_v45 = vmul.f32 %v1446_v1, %v1350_v25  ;;  %v1482_v0 = vmul.f32 %v1446_v1, %v1362_v33  ;;  %v1486_v38 = vmul.f32 %v1446_v1, %v1374_v41 }
 0x1ee   :  { %v1490_v42 = vmul.f32 %v1446_v1, %v1386_v49  ;;  %v1498_v25 = vmul.f32 %v1446_v1, %v1398_v30 }
 0x1f4   :  { %v1448_v21 = vpop.eup %658 }
 0x1f5   :  { %v472_v44 = vmul.f32 %v1448_v21, %v1046_v6  ;;  %v473_v52 = vmul.f32 %v1448_v21, %v1050_v56  ;;  %v474_v33 = vmul.f32 %v1448_v21, %v1068_v60  ;;  %v1504_v41 = vmul.f32 %v1448_v21, %v1378_v50 }
 0x1f6   :  { %v1508_v49 = vmul.f32 %v1448_v21, %v1390_v36  ;;  %v1512_v6 = vmul.f32 %v1448_v21, %v1406_v11  ;;  %v1516_v56 = vmul.f32 %v1448_v21, %v1414_v13  ;;  %v1520_v30 = vmul.f32 %v1448_v21, %v1422_v32 }
 0x1f7   :  { %v1523_v60 = vmul.f32 %v1448_v21, %v386_v35  ;;  %v1526_v50 = vmul.f32 %v1448_v21, %v387_v20  ;;  %v1529_v36 = vmul.f32 %v1448_v21, %v388_v46  ;;  %v1532_v11 = vmul.f32 %v1448_v21, %v389_v7 }
 0x1f8   :  { %v1535_v28 = vmul.f32 %v1448_v21, %v390_v31  ;;  %v1539_v13 = vmul.f32 %v1446_v1, %v1402_v54  ;;  %v475_v32 = vmul.f32 %v1448_v21, %v1080_v14  ;;  %v510_v35 = vsub.f32 %v274_v34, %v472_v44 }
 0x1f9   :  { %v511_v23 = vsub.f32 %v275_v9, %v473_v52  ;;  %v476_v20 = vmul.f32 %v1448_v21, %v1092_v4  ;;  %v512_v46 = vsub.f32 %v276_v62, %v474_v33  ;;  %v538_v7 = vsub.f32 %v1462_v24, %v1504_v41  ;;  %v1835_v9 = vld [vmem:[#allocation35_spill] sm:$0xff]  ;;  %v1836_v4 = vld [vmem:[#allocation36_spill] sm:$0xff] }
 0x1fa   :  { %v539_v31 = vsub.f32 %v1466_v40, %v1508_v49  ;;  %v540_v16 = vsub.f32 %v1470_v27, %v1512_v6  ;;  %v541_v54 = vsub.f32 %v1474_v53, %v1516_v56  ;;  %v542_v14 = vsub.f32 %v1478_v45, %v1520_v30 }
 0x1fb   :  { %v477_v37 = vmul.f32 %v1448_v21, %v1104_v17  ;;  %v513_v29 = vsub.f32 %v277_v58, %v475_v32  ;;  %v548_v34 = vand.u32 2147483647, %v510_v35  ;;  %v549_v57 = vand.u32 2147483647, %v511_v23  ;;  %v1837_v32 = vld [vmem:[#allocation37_spill] sm:$0xff] }
 0x1fc   :  { %v279_v62 = vmul.f32 %v1446_v1, %v1835_v9  ;;  %v478_v44 = vmul.f32 %v1448_v21, %v1116_v12  ;;  %v514_v52 = vsub.f32 %v278_v63, %v476_v20  ;;  %v550_v33 = vand.u32 2147483647, %v512_v46 }
 0x1fd   :  { %v586_v22 = vadd.f32 %v549_v57, %v548_v34  ;;  %v280_v5 = vmul.f32 %v1446_v1, %v1836_v4  ;;  %v479_v2 = vmul.f32 %v1448_v21, %v1128_v3  ;;  %v551_v17 = vand.u32 2147483647, %v513_v29 }
 0x1fe   :  { %v515_v61 = vsub.f32 %v279_v62, %v477_v37  ;;  %v281_v35 = vmul.f32 %v1446_v1, %v1837_v32  ;;  %v480_v23 = vmul.f32 %v1448_v21, %v1140_v26  ;;  %v552_v12 = vand.u32 2147483647, %v514_v52 }
 0x1ff   :  { %v587_v58 = vadd.f32 %v586_v22, %v550_v33  ;;  %v516_v9 = vsub.f32 %v280_v5, %v478_v44  ;;  %v282_v20 = vmul.f32 %v1446_v1, %v1062_v15  ;;  %v481_v46 = vmul.f32 %v1448_v21, %v1150_v39 }
 0x200   :  { %v517_v4 = vsub.f32 %v281_v35, %v479_v2  ;;  %v553_v3 = vand.u32 2147483647, %v515_v61  ;;  %v283_v22 = vmul.f32 %v1446_v1, %v1076_v8  ;;  %v482_v29 = vmul.f32 %v1448_v21, %v1162_v43 }
 0x201   :  { %v588_v63 = vadd.f32 %v587_v58, %v551_v17  ;;  %v518_v34 = vsub.f32 %v282_v20, %v480_v23  ;;  %v554_v26 = vand.u32 2147483647, %v516_v9  ;;  %v284_v57 = vmul.f32 %v1446_v1, %v1086_v10  ;;  %v1838_v9 = vld [vmem:[#allocation38_spill] sm:$0xff] }
 0x202   :  { %v483_v15 = vmul.f32 %v1448_v21, %v1174_v47  ;;  %v519_v62 = vsub.f32 %v283_v22, %v481_v46  ;;  %v555_v39 = vand.u32 2147483647, %v517_v4  ;;  %v285_v61 = vmul.f32 %v1446_v1, %v1098_v48  ;;  %v1840_v4 = vld [vmem:[#allocation39_spill] sm:$0xff] }
 0x203   :  { %v589_v37 = vadd.f32 %v588_v63, %v552_v12  ;;  %v484_v8 = vmul.f32 %v1448_v21, %v1186_v51  ;;  %v520_v44 = vsub.f32 %v284_v57, %v482_v29  ;;  %v556_v43 = vand.u32 2147483647, %v518_v34  ;;  %v1839_v63 = vld [vmem:[#allocation46_spill] sm:$0xff]  ;;  %v1842_v34 = vld [vmem:[#allocation40_spill] sm:$0xff] }
 0x204   :  { %v286_v33 = vmul.f32 %v1446_v1, %v1110_v18  ;;  %v485_v10 = vmul.f32 %v1448_v21, %v1198_v55  ;;  %v521_v17 = vsub.f32 %v285_v61, %v483_v15  ;;  %v557_v47 = vand.u32 2147483647, %v519_v62 }
 0x205   :  { %v590_v5 = vadd.f32 %v589_v37, %v553_v3  ;;  %v287_v32 = vmul.f32 %v1446_v1, %v1122_v19  ;;  %v486_v48 = vmul.f32 %v1448_v21, %v1210_v59  ;;  %v558_v51 = vand.u32 2147483647, %v520_v44  ;;  %v1841_v37 = vld [vmem:[#allocation48_spill] sm:$0xff] }
 0x206   :  { %v522_v35 = vsub.f32 %v286_v33, %v484_v8  ;;  %v288_v12 = vmul.f32 %v1446_v1, %v1838_v9  ;;  %v487_v18 = vmul.f32 %v1448_v21, %v1839_v63  ;;  %v559_v55 = vand.u32 2147483647, %v521_v17  ;;  %v1845_v8 = vld [vmem:[#allocation52_spill] sm:$0xff]  ;;  %v1849_v9 = vld [vmem:[#allocation11_spill] sm:$0xff] }
 0x207   :  { %v591_v2 = vadd.f32 %v590_v5, %v554_v26  ;;  %v523_v20 = vsub.f32 %v287_v32, %v485_v10  ;;  %v289_v3 = vmul.f32 %v1446_v1, %v1840_v4  ;;  %v488_v19 = vmul.f32 %v1448_v21, %v1841_v37  ;;  %v1843_v5 = vld [vmem:[#allocation50_spill] sm:$0xff]  ;;  %v1851_v4 = vld [vmem:[#allocation13_spill] sm:$0xff] }
 0x208   :  { %v524_v22 = vsub.f32 %v288_v12, %v486_v48  ;;  %v560_v59 = vand.u32 2147483647, %v522_v35  ;;  %v290_v26 = vmul.f32 %v1446_v1, %v1842_v34  ;;  %v489_v57 = vmul.f32 %v1448_v21, %v1843_v5  ;;  %v1846_v10 = vld [vmem:[#allocation42_spill] sm:$0xff] }
 0x209   :  { %v592_v52 = vadd.f32 %v591_v2, %v555_v39  ;;  %v525_v15 = vsub.f32 %v289_v3, %v487_v18  ;;  %v561_v62 = vand.u32 2147483647, %v523_v20  ;;  %v1844_v2 = vld [vmem:[#allocation41_spill] sm:$0xff]  ;;  %v490_v44 = vmul.f32 %v1448_v21, %v1845_v8  ;;  %v1853_v34 = vld [vmem:[#allocation14_spill] sm:$0xff] }
 0x20a   :  { %v291_v61 = vmul.f32 %v1446_v1, %v1844_v2  ;;  %v292_v17 = vmul.f32 %v1446_v1, %v1846_v10  ;;  %v492_v12 = vmul.f32 %v1448_v21, %v1849_v9  ;;  %v493_v3 = vmul.f32 %v1448_v21, %v1851_v4  ;;  %v1855_v2 = vld [vmem:[#allocation15_spill] sm:$0xff]  ;;  %v1857_v10 = vld [vmem:[#allocation16_spill] sm:$0xff] }
 0x20b   :  { %v593_v58 = vadd.f32 %v592_v52, %v556_v43  ;;  %v526_v43 = vsub.f32 %v290_v26, %v488_v19  ;;  %v562_v52 = vand.u32 2147483647, %v524_v22  ;;  %v563_v48 = vand.u32 2147483647, %v525_v15 }
 0x20c   :  { %v527_v32 = vsub.f32 %v291_v61, %v489_v57  ;;  %v528_v63 = vsub.f32 %v292_v17, %v490_v44  ;;  %v494_v26 = vmul.f32 %v1448_v21, %v1853_v34  ;;  %v495_v61 = vmul.f32 %v1448_v21, %v1855_v2 }
 0x20d   :  { %v594_v23 = vadd.f32 %v593_v58, %v557_v47  ;;  %v1847_v47 = vld [vmem:[#allocation54_spill] sm:$0xff]  ;;  %v564_v18 = vand.u32 2147483647, %v526_v43  ;;  %v496_v17 = vmul.f32 %v1448_v21, %v1857_v10  ;;  %v580_v24 = vand.u32 2147483647, %v542_v14 }
 0x20e   :  { %v491_v58 = vmul.f32 %v1448_v21, %v1847_v47  ;;  %v565_v19 = vand.u32 2147483647, %v527_v32  ;;  %v566_v57 = vand.u32 2147483647, %v528_v63  ;;  %v1865_v40 = vsub.f32 %v1482_v0, %v1523_v60 }
 0x20f   :  { %v595_v46 = vadd.f32 %v594_v23, %v558_v51  ;;  %v1848_v51 = vld [vmem:[#allocation43_spill] sm:$0xff]  ;;  %v1866_v27 = vsub.f32 %v1486_v38, %v1526_v50  ;;  %v1867_v53 = vsub.f32 %v1490_v42, %v1529_v36  ;;  %v1868_v45 = vsub.f32 %v1539_v13, %v1535_v28 }
 0x210   :  { %v293_v23 = vmul.f32 %v1446_v1, %v1848_v51  ;;  %v1859_v51 = vld [vmem:[#allocation17_spill] sm:$0xff]  ;;  %v581_v49 = vand.u32 2147483647, %v1865_v40 }
 0x211   :  { %v596_v29 = vadd.f32 %v595_v46, %v559_v55  ;;  %v1850_v55 = vld [vmem:[#allocation44_spill] sm:$0xff]  ;;  %v582_v6 = vand.u32 2147483647, %v1866_v27  ;;  %v583_v56 = vand.u32 2147483647, %v1867_v53 }
 0x212   :  { %v294_v46 = vmul.f32 %v1446_v1, %v1850_v55  ;;  %v529_v37 = vsub.f32 %v293_v23, %v491_v58  ;;  %v497_v23 = vmul.f32 %v1448_v21, %v1859_v51  ;;  %v1861_v55 = vld [vmem:[#allocation18_spill] sm:$0xff]  ;;  %v585_v30 = vand.u32 2147483647, %v1868_v45 }
 0x213   :  { %v597_v39 = vadd.f32 %v596_v29, %v560_v59  ;;  %v1852_v59 = vld [vmem:[#allocation45_spill] sm:$0xff] }
 0x214   :  { %v295_v29 = vmul.f32 %v1446_v1, %v1852_v59  ;;  %v530_v5 = vsub.f32 %v294_v46, %v492_v12  ;;  %v567_v44 = vand.u32 2147483647, %v529_v37  ;;  %v498_v46 = vmul.f32 %v1448_v21, %v1861_v55  ;;  %v1863_v59 = vld [vmem:[#allocation19_spill] sm:$0xff] }
 0x215   :  { %v598_v33 = vadd.f32 %v597_v39, %v561_v62  ;;  %v1854_v62 = vld [vmem:[#allocation47_spill] sm:$0xff]  ;;  %v622_v51 = vsel %vm148_vm0, %v585_v30, 0.0 }
 0x216   :  { %v296_v39 = vmul.f32 %v1446_v1, %v1854_v62  ;;  %v531_v8 = vsub.f32 %v295_v29, %v493_v3  ;;  %v568_v58 = vand.u32 2147483647, %v530_v5  ;;  %v499_v29 = vmul.f32 %v1448_v21, %v1863_v59 }
 0x217   :  { %v599_v35 = vadd.f32 %v598_v33, %v562_v52  ;;  %v1856_v52 = vld [vmem:[#allocation49_spill] sm:$0xff]  ;;  %v576_v21 = vand.u32 2147483647, %v538_v7 }
 0x218   :  { %v297_v33 = vmul.f32 %v1446_v1, %v1856_v52  ;;  %v532_v47 = vsub.f32 %v296_v39, %v494_v26  ;;  %v569_v12 = vand.u32 2147483647, %v531_v8 }
 0x219   :  { %v600_v20 = vadd.f32 %v599_v35, %v563_v48  ;;  %v1858_v48 = vld [vmem:[#allocation51_spill] sm:$0xff] }
 0x21a   :  { %v298_v35 = vmul.f32 %v1446_v1, %v1858_v48  ;;  %v533_v9 = vsub.f32 %v297_v33, %v495_v61  ;;  %v570_v3 = vand.u32 2147483647, %v532_v47  ;;  %v577_v47 = vand.u32 2147483647, %v539_v31 }
 0x21b   :  { %v601_v22 = vadd.f32 %v600_v20, %v564_v18  ;;  %v1860_v18 = vld [vmem:[#allocation53_spill] sm:$0xff]  ;;  %v579_v48 = vand.u32 2147483647, %v541_v54  ;;  %v1869_v54 = vsub.f32 %v1498_v25, %v1532_v11 }
 0x21c   :  { %v299_v20 = vmul.f32 %v1446_v1, %v1860_v18  ;;  %v534_v4 = vsub.f32 %v298_v35, %v496_v17  ;;  %v571_v26 = vand.u32 2147483647, %v533_v9 }
 0x21d   :  { %v602_v15 = vadd.f32 %v601_v22, %v565_v19  ;;  %v1862_v19 = vld [vmem:[#allocation55_spill] sm:$0xff]  ;;  %v584_v0 = vand.u32 2147483647, %v1869_v54 }
 0x21e   :  { %v300_v22 = vmul.f32 %v1446_v1, %v1862_v19  ;;  %v535_v34 = vsub.f32 %v299_v20, %v497_v23  ;;  %v572_v39 = vand.u32 2147483647, %v534_v4 }
 0x21f   :  { %v603_v43 = vadd.f32 %v602_v15, %v566_v57  ;;  %v1864_v57 = vld [vmem:[#allocation12_spill] sm:$0xff] }
 0x220   :  { %v301_v15 = vmul.f32 %v1446_v1, %v1864_v57  ;;  %v536_v62 = vsub.f32 %v300_v22, %v498_v46  ;;  %v573_v8 = vand.u32 2147483647, %v535_v34 }
 0x221   :  { %v604_v32 = vadd.f32 %v603_v43, %v567_v44 }
 0x222   :  { %v537_v61 = vsub.f32 %v301_v15, %v499_v29  ;;  %v574_v43 = vand.u32 2147483647, %v536_v62 }
 0x223   :  { %v605_v63 = vadd.f32 %v604_v32, %v568_v58  ;;  %v578_v58 = vand.u32 2147483647, %v540_v16 }
 0x224   :  { %v575_v33 = vand.u32 2147483647, %v537_v61 }
 0x225   :  { %v606_v37 = vadd.f32 %v605_v63, %v569_v12 }
 0x227   :  { %v607_v5 = vadd.f32 %v606_v37, %v570_v3 }
 0x229   :  { %v608_v2 = vadd.f32 %v607_v5, %v571_v26 }
 0x22b   :  { %v609_v44 = vadd.f32 %v608_v2, %v572_v39 }
 0x22d   :  { %v610_v52 = vadd.f32 %v609_v44, %v573_v8 }
 0x22f   :  { %v611_v10 = vadd.f32 %v610_v52, %v574_v43 }
 0x231   :  { %v612_v17 = vadd.f32 %v611_v10, %v575_v33 }
 0x233   :  { %v613_v1 = vadd.f32 %v612_v17, %v576_v21 }
 0x235   :  { %v614_v32 = vadd.f32 %v613_v1, %v577_v47 }
 0x237   :  { %v615_v35 = vadd.f32 %v614_v32, %v578_v58 }
 0x239   :  { %v616_v41 = vadd.f32 %v615_v35, %v579_v48 }
 0x23b   :  { %v617_v7 = vadd.f32 %v616_v41, %v580_v24 }
 0x23d   :  { %v618_v31 = vadd.f32 %v617_v7, %v581_v49 }
 0x23f   :  { %v619_v16 = vadd.f32 %v618_v31, %v582_v6 }
 0x241   :  { %v620_v60 = vadd.f32 %v619_v16, %v583_v56 }
 0x243   :  { %v621_v14 = vadd.f32 %v620_v60, %v584_v0 }
 0x245   :  { %v623_v38 = vadd.f32 %v622_v51, %v621_v14 }
 0x247   :  { %624 = vadd.xlane.f32.xlu0 %v623_v38 }
 0x2d4   :  { %v625_v50 = vpop.xlane.xlu0 %624 }
 0x2d5   :  { %v626_v23 = vrot.slane %v625_v50, 4 }
 0x2d7   :  { %v627_v9 = vadd.f32 %v626_v23, %v625_v50 }
 0x2d9   :  { %v628_v42 = vrot.slane %v627_v9, 2 }
 0x2db   :  { %v629_v36 = vadd.f32 %v628_v42, %v627_v9 }
 0x2dd   :  { %v630_v12 = vrot.slane %v629_v36, 1 }
 0x2df   :  { %v631_v63 = vadd.f32 %v630_v12, %v629_v36 }
 0x2e1   :  { %651 = vpush %v631_v63 }
 0x312   :  { %s652_s5 = spop %651 }
 0x313   :  { %v633_v25 = vstv %s652_s5 }
 0x314   :  { %634 = vst [vmem:[#allocation7] sm:$0xff] %v633_v25 }
 0x315   :  { %715 = shalt.err (!%p712_p6)
}
 0x316   :  { %s716_s9 = scalar_lea.hbm %s1702_s2, 128 }
 0x317   :  { %p717_p7 = scmp.ne.s32.totalorder %s1702_s2, %s716_s9  ;;  %p720_p8 = scmp.lt.u32.totalorder %s716_s9, %s1702_s2 }
 0x319   :  { %p722_p9 = pnand %p720_p8, %p717_p7 }
 0x31b   :  { %725 = shalt.err (!%p722_p9)
}
 0x31c   :  { %644 = dma.vmem_to_hbm [thread:$0]  %s642_s4, 128, %s1702_s2, [#allocation4]  }
 0x31d   :  { %730 = dma.done.wait [#allocation4], 128  }
 0x31e   :  { %731 = vsyncadd [#allocation4], 4294967168 }
 0x31f   :  { %648 = vsyncpa [#allocation3], 1 }
 0x320   :  { %649 = vsyncpa [#allocation6], 1 }
 0x321   :  { %650 = vsyncpa [#allocation4], 1 }

</bundles_post_ra>
